<compile_context>
chip_gen: v7x
topology: tpu7x:2x2x1
jax: 0.10.0
libtpu: 0.0.40
codegen_flags: <defaults>
</compile_context>

<pallas_src>
import functools

import jax
import jax.numpy as jnp
from jax.experimental import pallas as pl
from jax.experimental.pallas import tpu as pltpu


def _round_up(v, m):
    return (v + m - 1) // m * m


def _pick_tile(dim, candidates=(512, 384, 256, 128)):
    """Largest 128-multiple tile that divides `dim` (dim itself is a 128-multiple)."""
    for t in candidates:
        if dim % t == 0:
            return t
    return 128


def _variationhead_kernel(x_mm_ref, w_ref, x_res_ref, o_ref, *, ratio, compute_dtype):
    """One (i, j, k) grid step of y = ratio * (x @ W_t) + (1 - ratio) * x.

    Accumulates directly into the f32 output block (no scratch); the residual mix
    runs once in the final-K epilogue.
    """
    k = pl.program_id(2)

    @pl.when(k == 0)
    def _init():
        o_ref[...] = jnp.zeros_like(o_ref)

    # In-kernel f32 -> bf16 cast of the matmul operand (free under a DMA/MXU-bound
    # loop); MXU accumulates in f32 via preferred_element_type.
    o_ref[...] += jnp.dot(
        x_mm_ref[...].astype(compute_dtype),
        w_ref[...],
        preferred_element_type=jnp.float32,
    )

    @pl.when(k == pl.num_programs(2) - 1)
    def _epilogue():
        residual = x_res_ref[...].astype(jnp.float32)
        o_ref[...] = ratio * o_ref[...] + (1.0 - ratio) * residual


def prepare_weight(w_t, *, compute_dtype=jnp.bfloat16):
    """One-time weight prep (module init, NOT per forward call).

    w_t: (D_in, D_out) weight stored as (in, out) = PyTorch weight transposed.
    Pads to a 128-multiple only if needed and casts to the matmul compute dtype.
    """
    d_in, d_out = w_t.shape
    assert d_in == d_out, "Variationhead uses a square (D, D) weight"
    dp = _round_up(d_in, 128)
    if dp != d_in:
        w_t = jnp.pad(w_t, ((0, dp - d_in), (0, dp - d_in)))
    return w_t.astype(compute_dtype)


def variationhead_forward(x, w_prepared, ratio=1e-5):
    """Forward of Variationhead.

    x          : [B, D] float32 activations.
    w_prepared : [Dp, Dp] weight from prepare_weight() (Dp = D rounded up to 128).
    ratio      : static Python float (baked into the kernel; default 1e-5).
    """
    B, D = x.shape
    Dp = w_prepared.shape[0]
    assert w_prepared.shape == (Dp, Dp) and Dp >= D and Dp % 128 == 0

    # ---- batch tile (sublane-aligned; avoid padding when possible) ----
    if B <= 256:
        tm = _round_up(B, 8)
    elif B % 256 == 0:
        tm = 256
    else:
        tm = 128
    Bp = _round_up(B, tm)

    # ---- feature tiles: no padding beyond the 128 alignment already in w_prepared ----
    if Dp <= 512:
        # Small-weight regime: single K step; 2-way N split (when 128-aligned) so both
        # v7x TensorCores get work. Otherwise a single lane-dense output block.
        tk = Dp
        tn = Dp // 2 if Dp % 256 == 0 else Dp
    else:
        tk = _pick_tile(Dp)
        tn = _pick_tile(Dp)

    # ---- pad x only if actually needed (f32, single copy used for both paths) ----
    if (Bp, Dp) != (B, D):
        x_pad = jnp.pad(x, ((0, Bp - B), (0, Dp - D)))
    else:
        x_pad = x
    x_pad = x_pad.astype(jnp.float32)

    grid = (Bp // tm, Dp // tn, Dp // tk)  # reduction (k) axis last

    # VMEM budget from the actual double-buffered tile footprint (+ headroom),
    # capped for v7x's 64 MiB physical VMEM.
    w_bytes = jnp.dtype(w_prepared.dtype).itemsize
    tile_bytes = 2 * (tm * tk * 4 + tk * tn * w_bytes + tm * tn * 4) + 2 * tm * tn * 4
    vmem_limit = min(max(2 * tile_bytes, 4 << 20), 64 << 20)

    out = pl.pallas_call(
        functools.partial(
            _variationhead_kernel,
            ratio=float(ratio),
            compute_dtype=w_prepared.dtype,
        ),
        out_shape=jax.ShapeDtypeStruct((Bp, Dp), jnp.float32),
        grid=grid,
        in_specs=[
            pl.BlockSpec((tm, tk), lambda i, j, k: (i, k)),  # x, matmul operand
            pl.BlockSpec((tk, tn), lambda i, j, k: (k, j)),  # W_t tile
            pl.BlockSpec((tm, tn), lambda i, j, k: (i, j)),  # x, residual (epilogue)
        ],
        out_specs=pl.BlockSpec((tm, tn), lambda i, j, k: (i, j)),
        compiler_params=pltpu.CompilerParams(
            dimension_semantics=("parallel", "parallel", "arbitrary"),
            vmem_limit_bytes=vmem_limit,
        ),
    )(x_pad, w_prepared, x_pad)

    out = out[:B, :D]
    return out.astype(x.dtype)


def identity_weight(input_dim, dtype=jnp.float32):
    """Equivalent of Variationhead.zero_weights(): identity weight (symmetric, so (in,out)==(out,in))."""
    return jnp.eye(input_dim, dtype=dtype)


def init_params(key, input_dim):
    """PyTorch-default-like uniform init for nn.Linear(bias=False), stored as (in, out)."""
    bound = 1.0 / (input_dim ** 0.5)
    w = jax.random.uniform(key, (input_dim, input_dim), jnp.float32, -bound, bound)
    return w.T  # (in, out)


if __name__ == "__main__":
    key = jax.random.PRNGKey(0)
    k_x, k_w = jax.random.split(key)

    batch = 8
    input_dim = 384  # 128-multiple, not a power of two: exercises the no-padding path
    ratio = 1e-5

    x = jax.random.normal(k_x, (batch, input_dim), jnp.float32)
    w_t = init_params(k_w, input_dim)

    # Weight pad/cast hoisted off the hot path (done once, like module init).
    w_mm = prepare_weight(w_t, compute_dtype=jnp.bfloat16)

    fwd = jax.jit(functools.partial(variationhead_forward, ratio=ratio))
    out = jax.block_until_ready(fwd(x, w_mm))

    # Pure-JAX f32 reference of the same forward pass.
    ref = ratio * (x @ w_t) + (1.0 - ratio) * x
    assert out.shape == (batch, input_dim)
    assert jnp.allclose(out, ref, atol=1e-5, rtol=1e-5), (
        float(jnp.max(jnp.abs(out - ref)))
    )

    # zero_weights() (identity) configuration: output ≈ x exactly.
    w_id = prepare_weight(identity_weight(input_dim), compute_dtype=jnp.bfloat16)
    out_id = jax.block_until_ready(fwd(x, w_id))
    ref_id = ratio * x + (1.0 - ratio) * x
    assert jnp.allclose(out_id, ref_id, atol=1e-5, rtol=1e-5)

    print("KERNEL_OK")
</pallas_src>

<mosaic_0001>
module attributes {stable_mosaic.version = 11 : i64} {
  func.func @_variationhead_kernel(%arg0: i32, %arg1: i32, %arg2: i32, %arg3: memref<8x384xf32, #tpu.memory_space<vmem>>, %arg4: memref<384x384xbf16, #tpu.memory_space<vmem>>, %arg5: memref<8x384xf32, #tpu.memory_space<vmem>>, %arg6: memref<8x384xf32, #tpu.memory_space<vmem>>) attributes {dimension_semantics = [#tpu.dimension_semantics<parallel>, #tpu.dimension_semantics<parallel>, #tpu.dimension_semantics<arbitrary>], iteration_bounds = array<i64: 1, 1, 1>, scalar_prefetch = 0 : i64, scratch_operands = 0 : i64, tpu.core_type = #tpu.core_type<tc>, window_params = [{transform_indices = @transform_0, window_bounds = array<i64: 8, 384>}, {transform_indices = @transform_1, window_bounds = array<i64: 384, 384>}, {transform_indices = @transform_2, window_bounds = array<i64: 8, 384>}, {transform_indices = @transform_3, window_bounds = array<i64: 8, 384>}]} {
    %c0_i32 = arith.constant 0 : i32
    %0 = arith.cmpi eq, %arg2, %c0_i32 : i32
    %1 = arith.extui %0 : i1 to i32
    %c0_i32_0 = arith.constant 0 : i32
    %2 = arith.cmpi ne, %1, %c0_i32_0 : i32
    scf.if %2 {
      %cst_10 = arith.constant 0.000000e+00 : f32
      %13 = vector.broadcast %cst_10 : f32 to vector<8x384xf32>
      %c0_11 = arith.constant 0 : index
      %c0_12 = arith.constant 0 : index
      %14 = vector.load %arg6[%c0_11, %c0_12] : memref<8x384xf32, #tpu.memory_space<vmem>>, vector<8x384xf32>
      tpu.vector_store %arg6[%c0_11, %c0_12], %13 {strides = array<i32>} : memref<8x384xf32, #tpu.memory_space<vmem>>, vector<8x384xf32>,
    } else {
    }
    %c0 = arith.constant 0 : index
    %c0_1 = arith.constant 0 : index
    %3 = vector.load %arg6[%c0, %c0_1] : memref<8x384xf32, #tpu.memory_space<vmem>>, vector<8x384xf32>
    %c0_2 = arith.constant 0 : index
    %c0_3 = arith.constant 0 : index
    %4 = vector.load %arg3[%c0_2, %c0_3] : memref<8x384xf32, #tpu.memory_space<vmem>>, vector<8x384xf32>
    %5 = arith.truncf %4 : vector<8x384xf32> to vector<8x384xbf16>
    %c0_4 = arith.constant 0 : index
    %c0_5 = arith.constant 0 : index
    %6 = vector.load %arg4[%c0_4, %c0_5] : memref<384x384xbf16, #tpu.memory_space<vmem>>, vector<384x384xbf16>
    %cst = arith.constant dense<0.000000e+00> : vector<8x384xf32>
    %7 = tpu.matmul %5, %6, %cst {dimension_numbers = #tpu.dot_dimension_numbers<[1], [0], [0], [1], [0, 0, 1, 1], [], []>} : vector<8x384xbf16>, vector<384x384xbf16>, vector<8x384xf32> -> vector<8x384xf32>
    %8 = arith.addf %3, %7 : vector<8x384xf32>
    %c0_6 = arith.constant 0 : index
    %c0_7 = arith.constant 0 : index
    %9 = vector.load %arg6[%c0_6, %c0_7] : memref<8x384xf32, #tpu.memory_space<vmem>>, vector<8x384xf32>
    tpu.vector_store %arg6[%c0_6, %c0_7], %8 {strides = array<i32>} : memref<8x384xf32, #tpu.memory_space<vmem>>, vector<8x384xf32>,
    %c0_i32_8 = arith.constant 0 : i32
    %10 = arith.cmpi eq, %arg2, %c0_i32_8 : i32
    %11 = arith.extui %10 : i1 to i32
    %c0_i32_9 = arith.constant 0 : i32
    %12 = arith.cmpi ne, %11, %c0_i32_9 : i32
    scf.if %12 {
      %c0_10 = arith.constant 0 : index
      %c0_11 = arith.constant 0 : index
      %13 = vector.load %arg5[%c0_10, %c0_11] : memref<8x384xf32, #tpu.memory_space<vmem>>, vector<8x384xf32>
      %c0_12 = arith.constant 0 : index
      %c0_13 = arith.constant 0 : index
      %14 = vector.load %arg6[%c0_12, %c0_13] : memref<8x384xf32, #tpu.memory_space<vmem>>, vector<8x384xf32>
      %cst_14 = arith.constant 9.99999974E-6 : f32
      %15 = vector.broadcast %cst_14 : f32 to vector<8x384xf32>
      %16 = arith.mulf %15, %14 : vector<8x384xf32>
      %cst_15 = arith.constant 0.999989986 : f32
      %17 = vector.broadcast %cst_15 : f32 to vector<8x384xf32>
      %18 = arith.mulf %17, %13 : vector<8x384xf32>
      %19 = arith.addf %16, %18 : vector<8x384xf32>
      %c0_16 = arith.constant 0 : index
      %c0_17 = arith.constant 0 : index
      %20 = vector.load %arg6[%c0_16, %c0_17] : memref<8x384xf32, #tpu.memory_space<vmem>>, vector<8x384xf32>
      tpu.vector_store %arg6[%c0_16, %c0_17], %19 {strides = array<i32>} : memref<8x384xf32, #tpu.memory_space<vmem>>, vector<8x384xf32>,
    } else {
    }
    return
  }
  func.func @transform_0(%arg0: i32, %arg1: i32, %arg2: i32) -> (i32, i32) {
    %c0_i32 = arith.constant 0 : i32
    return %arg0, %arg2 : i32, i32
  }
  func.func @transform_1(%arg0: i32, %arg1: i32, %arg2: i32) -> (i32, i32) {
    %c0_i32 = arith.constant 0 : i32
    return %arg2, %arg1 : i32, i32
  }
  func.func @transform_2(%arg0: i32, %arg1: i32, %arg2: i32) -> (i32, i32) {
    %c0_i32 = arith.constant 0 : i32
    return %arg0, %arg1 : i32, i32
  }
  func.func @transform_3(%arg0: i32, %arg1: i32, %arg2: i32) -> (i32, i32) {
    %c0_i32 = arith.constant 0 : i32
    return %arg0, %arg1 : i32, i32
  }
}

</mosaic_0001>

<bundles_post_ra>
// kernel: variationhead_forward.1
= control target key start
LH: loop header
LB: loop body
LE: loop exit
PB: predicated region body
PF: predicated region fallthrough
CT: control target
= control target key end

     0   :  { %8 = vsyncpa [#allocation3], 0  ;;  %s1157_s0 = inlined_call_operand.hbm [shape: f32[8,384], index: 0, kind: input, shape index: {}, may-alias: {0,2}]   ;;  %s1158_s1 = inlined_call_operand.hbm [shape: bf16[384,384], index: 1, kind: input, shape index: {}]   ;;  %s1159_s2 = inlined_call_operand.hbm [shape: f32[8,384], index: 2, kind: input, shape index: {}, may-alias: {0,2}]   ;;  %s1160_s3 = inlined_call_operand.hbm [shape: f32[8,384], index: 3, kind: output, shape index: {}]  }
   0x1   :  { %9 = vsyncpa [#allocation6], 0 }
   0x2   :  { %10 = vsyncpa [#allocation4], 0  ;;  %s1076_s12 = smov [#allocation5]   ;;  %s982_s16 = scalar_lea.hbm %s1158_s1, 9216 }
   0x3   :  { %s26_s13 = sshll.u32 %s1076_s12, 4  ;;  %p983_p0 = scmp.ne.s32.totalorder %s1158_s1, %s982_s16  ;;  %s27_s13 = int_to_ptr.vmem [resolvable:$true] %s26_s13 }
   0x4   :  { %p986_p1 = scmp.lt.u32.totalorder %s982_s16, %s1158_s1 }
   0x6   :  { %p988_p2 = pnand %p986_p1, %p983_p0 }
   0x8   :  { %991 = shalt.err (!%p988_p2)
}
   0x9   :  { %s992_s21 = scalar_lea.vmem %s27_s13, 9216  ;;  %p997_p4 = scmp.lt.s32.totalorder %s27_s13, %s27_s13 }
   0xa   :  { %p993_p3 = scmp.ne.s32.totalorder %s27_s13, %s992_s21  ;;  %p998_p5 = scmp.lt.s32.totalorder %s992_s21, %s992_s21 }
   0xc   :  { %p999_p6 = por %p998_p5, %p997_p4 }
   0xe   :  { %p1000_p7 = pnand %p999_p6, %p993_p3 }
  0x10   :  { %1003 = shalt.err (!%p1000_p7)
}
  0x11   :  { %s1077_s22 = smov 192   ;;  %s1078_s23 = smov 12  }
  0x12   :  { %32 = dma.hbm_to_vmem [thread:$0]  %s1158_s1, 9216, %s27_s13, [#allocation6], %s1077_s22, %s1077_s22, %s1078_s23  }
  0x13   :  { %s1079_s26 = smov [#allocation2]   ;;  %s1080_s28 = smov [#allocation7]  }
  0x14   :  { %s17_s27 = sshll.u32 %s1079_s26, 4  ;;  %s39_s29 = sshll.u32 %s1080_s28, 4  ;;  %s18_s27 = int_to_ptr.vmem [resolvable:$true] %s17_s27  ;;  %s40_s29 = int_to_ptr.vmem [resolvable:$true] %s39_s29 }
  0x15   :  { %s1004_s5 = scalar_lea.hbm %s1157_s0, 384 }
  0x16   :  { %p1005_p8 = scmp.ne.s32.totalorder %s1157_s0, %s1004_s5  ;;  %p1008_p9 = scmp.lt.u32.totalorder %s1004_s5, %s1157_s0 }
  0x18   :  { %p1010_p10 = pnand %p1008_p9, %p1005_p8 }
  0x1a   :  { %1013 = shalt.err (!%p1010_p10)
}
  0x1b   :  { %s1014_s1 = scalar_lea.vmem %s18_s27, 384  ;;  %p1019_p12 = scmp.lt.s32.totalorder %s18_s27, %s18_s27 }
  0x1c   :  { %p1015_p11 = scmp.ne.s32.totalorder %s18_s27, %s1014_s1  ;;  %p1020_p13 = scmp.lt.s32.totalorder %s1014_s1, %s1014_s1 }
  0x1e   :  { %p1021_p0 = por %p1020_p13, %p1019_p12 }
  0x20   :  { %p1022_p1 = pnand %p1021_p0, %p1015_p11 }
  0x22   :  { %1025 = shalt.err (!%p1022_p1)
}
  0x23   :  { %20 = dma.hbm_to_vmem [thread:$0]  %s1157_s0, 384, %s18_s27, [#allocation3]  }
  0x24   :  { %s1026_s14 = scalar_lea.hbm %s1159_s2, 384 }
  0x25   :  { %p1027_p2 = scmp.ne.s32.totalorder %s1159_s2, %s1026_s14  ;;  %p1030_p3 = scmp.lt.u32.totalorder %s1026_s14, %s1159_s2 }
  0x27   :  { %p1032_p4 = pnand %p1030_p3, %p1027_p2 }
  0x29   :  { %1035 = shalt.err (!%p1032_p4)
}
  0x2a   :  { %s1036_s19 = scalar_lea.vmem %s40_s29, 384  ;;  %p1041_p6 = scmp.lt.s32.totalorder %s40_s29, %s40_s29 }
  0x2b   :  { %p1037_p5 = scmp.ne.s32.totalorder %s40_s29, %s1036_s19  ;;  %p1042_p7 = scmp.lt.s32.totalorder %s1036_s19, %s1036_s19 }
  0x2d   :  { %p1043_p8 = por %p1042_p7, %p1041_p6 }
  0x2f   :  { %p1044_p9 = pnand %p1043_p8, %p1037_p5 }
  0x31   :  { %1047 = shalt.err (!%p1044_p9)
}
  0x32   :  { %42 = dma.hbm_to_vmem [thread:$0]  %s1159_s2, 384, %s40_s29, [#allocation6]  }
  0x33   :  { %1070 = dma.done.wait [#allocation3], 384  }
  0x34   :  { %1071 = vsyncadd [#allocation3], 4294966912 }
  0x35   :  { %1072 = dma.done.wait [#allocation6], 9600  }
  0x36   :  { %1073 = vsyncadd [#allocation6], 4294957696  ;;  %v1081_v0 = vmov 0   ;;  %v886_v1 = vld [vmem:[#allocation5 + $0x4] ss:$12 sps:$4 sm:$0xff]   ;;  %v65_v40 = vld [vmem:[#allocation2 + $0x10] sm:$0xff] }
  0x37   :  { %622 = vmatprep.mubr.bf16.mxu1 %v1081_v0  ;;  %v888_v2 = vld [vmem:[#allocation5] ss:$12 sps:$4 sm:$0xff]   ;;  %549 = vmatprep.subr.bf16.mxu0 %v886_v1  ;;  %v889_v3 = vld [vmem:[#allocation5 + $0x1c] ss:$12 sps:$4 sm:$0xff]   ;;  %v891_v4 = vld [vmem:[#allocation5 + $0x18] ss:$12 sps:$4 sm:$0xff]   ;;  %v1141_v44 = vpack.c.bf16 %v65_v40, %v65_v40 }
  0x38   :  { %550 = vmatpush1.bf16.msra.mxu0 %v888_v2  ;;  %v892_v5 = vld [vmem:[#allocation5 + $0x34] ss:$12 sps:$4 sm:$0xff]   ;;  %v894_v6 = vld [vmem:[#allocation5 + $0x30] ss:$12 sps:$4 sm:$0xff]   ;;  %v895_v7 = vld [vmem:[#allocation5 + $0x4c] ss:$12 sps:$4 sm:$0xff]  }
  0x39   :  { %551 = vmatprep.subr.bf16.mxu0 %v889_v3  ;;  %v907_v8 = vld [vmem:[#allocation5 + $0x184] ss:$12 sps:$4 sm:$0xff]   ;;  %v909_v9 = vld [vmem:[#allocation5 + $0x180] ss:$12 sps:$4 sm:$0xff]   ;;  %v897_v10 = vld [vmem:[#allocation5 + $0x48] ss:$12 sps:$4 sm:$0xff]  }
  0x3a   :  { %v898_v11 = vld [vmem:[#allocation5 + $0x64] ss:$12 sps:$4 sm:$0xff]   ;;  %590 = vmatprep.subr.bf16.mxu1 %v907_v8  ;;  %v913_v12 = vld [vmem:[#allocation5 + $0x19c] ss:$12 sps:$4 sm:$0xff]   ;;  %v900_v14 = vld [vmem:[#allocation5 + $0x60] ss:$12 sps:$4 sm:$0xff]  }
  0x3b   :  { %591 = vmatpush1.bf16.msra.mxu1 %v909_v9  ;;  %v915_v13 = vld [vmem:[#allocation5 + $0x198] ss:$12 sps:$4 sm:$0xff]   ;;  %v919_v15 = vld [vmem:[#allocation5 + $0x1b4] ss:$12 sps:$4 sm:$0xff]   ;;  %v901_v16 = vld [vmem:[#allocation5 + $0x7c] ss:$12 sps:$4 sm:$0xff]  }
  0x3c   :  { %552 = vmatpush1.bf16.msra.mxu0 %v891_v4  ;;  %592 = vmatprep.subr.bf16.mxu1 %v913_v12  ;;  %v921_v17 = vld [vmem:[#allocation5 + $0x1b0] ss:$12 sps:$4 sm:$0xff]   ;;  %v925_v18 = vld [vmem:[#allocation5 + $0x1cc] ss:$12 sps:$4 sm:$0xff]   ;;  %v904_v20 = vld [vmem:[#allocation5 + $0x94] ss:$12 sps:$4 sm:$0xff]  }
  0x3d   :  { %553 = vmatprep.subr.bf16.mxu0 %v892_v5  ;;  %v903_v19 = vld [vmem:[#allocation5 + $0x78] ss:$12 sps:$4 sm:$0xff]   ;;  %v927_v21 = vld [vmem:[#allocation5 + $0x1c8] ss:$12 sps:$4 sm:$0xff]   ;;  %v906_v23 = vld [vmem:[#allocation5 + $0x90] ss:$12 sps:$4 sm:$0xff]  }
  0x3e   :  { %v931_v22 = vld [vmem:[#allocation5 + $0x1e4] ss:$12 sps:$4 sm:$0xff]   ;;  %v910_v24 = vld [vmem:[#allocation5 + $0xac] ss:$12 sps:$4 sm:$0xff]   ;;  %v937_v26 = vld [vmem:[#allocation5 + $0x1fc] ss:$12 sps:$4 sm:$0xff]  }
  0x3f   :  { %593 = vmatpush1.bf16.msra.mxu1 %v915_v13  ;;  %v933_v25 = vld [vmem:[#allocation5 + $0x1e0] ss:$12 sps:$4 sm:$0xff]   ;;  %v912_v27 = vld [vmem:[#allocation5 + $0xa8] ss:$12 sps:$4 sm:$0xff]   ;;  %v916_v28 = vld [vmem:[#allocation5 + $0xc4] ss:$12 sps:$4 sm:$0xff]  }
  0x40   :  { %554 = vmatpush1.bf16.msra.mxu0 %v894_v6  ;;  %594 = vmatprep.subr.bf16.mxu1 %v919_v15  ;;  %v939_v29 = vld [vmem:[#allocation5 + $0x1f8] ss:$12 sps:$4 sm:$0xff]   ;;  %v943_v30 = vld [vmem:[#allocation5 + $0x214] ss:$12 sps:$4 sm:$0xff]   ;;  %v922_v32 = vld [vmem:[#allocation5 + $0xdc] ss:$12 sps:$4 sm:$0xff]  }
  0x41   :  { %555 = vmatprep.subr.bf16.mxu0 %v895_v7  ;;  %v918_v31 = vld [vmem:[#allocation5 + $0xc0] ss:$12 sps:$4 sm:$0xff]   ;;  %v945_v33 = vld [vmem:[#allocation5 + $0x210] ss:$12 sps:$4 sm:$0xff]   ;;  %v924_v35 = vld [vmem:[#allocation5 + $0xd8] ss:$12 sps:$4 sm:$0xff]  }
  0x42   :  { %v949_v34 = vld [vmem:[#allocation5 + $0x22c] ss:$12 sps:$4 sm:$0xff]   ;;  %v64_v36 = vld [vmem:[#allocation2 + $0x8] sm:$0xff]  ;;  %v946_v52 = vld [vmem:[#allocation5 + $0x13c] ss:$12 sps:$4 sm:$0xff]   ;;  %v1082_v5 = vmov 0.0  }
  0x43   :  { %595 = vmatpush1.bf16.msra.mxu1 %v921_v17  ;;  %v928_v37 = vld [vmem:[#allocation5 + $0xf4] ss:$12 sps:$4 sm:$0xff]   ;;  %v67_v39 = vpack.c.bf16 %v64_v36, %v64_v36  ;;  %v930_v42 = vld [vmem:[#allocation5 + $0xf0] ss:$12 sps:$4 sm:$0xff]   ;;  %v934_v43 = vld [vmem:[#allocation5 + $0x10c] ss:$12 sps:$4 sm:$0xff]  }
  0x44   :  { %556 = vmatpush1.bf16.msra.mxu0 %v897_v10  ;;  %596 = vmatprep.subr.bf16.mxu1 %v925_v18  ;;  %v951_v38 = vld [vmem:[#allocation5 + $0x228] ss:$12 sps:$4 sm:$0xff]   ;;  %v960_v46 = vld [vmem:[#allocation5 + $0xe0] ss:$12 sps:$4 sm:$0xff]   ;;  %v940_v48 = vld [vmem:[#allocation5 + $0x124] ss:$12 sps:$4 sm:$0xff]  }
  0x45   :  { %557 = vmatprep.subr.bf16.mxu0 %v898_v11  ;;  %v955_v41 = vld [vmem:[#allocation5 + $0xc8] ss:$12 sps:$4 sm:$0xff]   ;;  %581 = vmatprep.mubr.bf16.mxu0 %v67_v39  ;;  %v961_v49 = vld [vmem:[#allocation5 + $0x20] ss:$12 sps:$4 sm:$0xff]   ;;  %v963_v50 = vld [vmem:[#allocation5 + $0xf8] ss:$12 sps:$4 sm:$0xff]  }
  0x46   :  { %v956_v45 = vld [vmem:[#allocation5 + $0x8] ss:$12 sps:$4 sm:$0xff]   ;;  %v942_v51 = vld [vmem:[#allocation5 + $0x120] ss:$12 sps:$4 sm:$0xff]   ;;  %v964_v53 = vld [vmem:[#allocation5 + $0x38] ss:$12 sps:$4 sm:$0xff]  }
  0x47   :  { %597 = vmatpush1.bf16.msra.mxu1 %v927_v21  ;;  %v936_v47 = vld [vmem:[#allocation5 + $0x108] ss:$12 sps:$4 sm:$0xff]   ;;  %v966_v54 = vld [vmem:[#allocation5 + $0x110] ss:$12 sps:$4 sm:$0xff]   ;;  %v948_v55 = vld [vmem:[#allocation5 + $0x138] ss:$12 sps:$4 sm:$0xff]  }
  0x48   :  { %558 = vmatpush1.bf16.msra.mxu0 %v900_v14  ;;  %598 = vmatprep.subr.bf16.mxu1 %v931_v22  ;;  %v952_v56 = vld [vmem:[#allocation5 + $0x154] ss:$12 sps:$4 sm:$0xff]   ;;  %v967_v57 = vld [vmem:[#allocation5 + $0x50] ss:$12 sps:$4 sm:$0xff]   ;;  %v957_v60 = vld [vmem:[#allocation5 + $0x16c] ss:$12 sps:$4 sm:$0xff]  }
  0x49   :  { %559 = vmatprep.subr.bf16.mxu0 %v901_v16  ;;  %v969_v58 = vld [vmem:[#allocation5 + $0x128] ss:$12 sps:$4 sm:$0xff]   ;;  %v954_v59 = vld [vmem:[#allocation5 + $0x150] ss:$12 sps:$4 sm:$0xff]   ;;  %v972_v62 = vld [vmem:[#allocation5 + $0x140] ss:$12 sps:$4 sm:$0xff]  }
  0x4a   :  { %v970_v61 = vld [vmem:[#allocation5 + $0x68] ss:$12 sps:$4 sm:$0xff]   ;;  %v973_v1 = vld [vmem:[#allocation5 + $0x80] ss:$12 sps:$4 sm:$0xff]   ;;  %v975_v3 = vld [vmem:[#allocation5 + $0x158] ss:$12 sps:$4 sm:$0xff]  }
  0x4b   :  { %599 = vmatpush1.bf16.msra.mxu1 %v933_v25  ;;  %v959_v63 = vld [vmem:[#allocation5 + $0x168] ss:$12 sps:$4 sm:$0xff]   ;;  %v976_v6 = vld [vmem:[#allocation5 + $0x98] ss:$12 sps:$4 sm:$0xff]   ;;  %v978_v7 = vld [vmem:[#allocation5 + $0x170] ss:$12 sps:$4 sm:$0xff]  }
  0x4c   :  { %560 = vmatpush1.bf16.msra.mxu0 %v903_v19  ;;  %600 = vmatprep.subr.bf16.mxu1 %v937_v26  ;;  %v63_v0 = vld [vmem:[#allocation2] sm:$0xff]  ;;  %vm1083_vm0 = vmmov 0   ;;  %v979_v9 = vld [vmem:[#allocation5 + $0xb0] ss:$12 sps:$4 sm:$0xff]   ;;  %v968_v10 = vld [vmem:[#allocation5 + $0x1b8] ss:$12 sps:$4 sm:$0xff]  }
  0x4d   :  { %561 = vmatprep.subr.bf16.mxu0 %v904_v20  ;;  %v66_v2 = vpack.c.bf16 %v63_v0, %v63_v0  ;;  %v962_v4 = vld [vmem:[#allocation5 + $0x188] ss:$12 sps:$4 sm:$0xff]   ;;  %v965_v8 = vld [vmem:[#allocation5 + $0x1a0] ss:$12 sps:$4 sm:$0xff]   ;;  %v971_v11 = vld [vmem:[#allocation5 + $0x1d0] ss:$12 sps:$4 sm:$0xff]  }
  0x4e   :  { %v974_v12 = vld [vmem:[#allocation5 + $0x1e8] ss:$12 sps:$4 sm:$0xff]   ;;  %v977_v13 = vld [vmem:[#allocation5 + $0x200] ss:$12 sps:$4 sm:$0xff]   ;;  %v980_v14 = vld [vmem:[#allocation5 + $0x218] ss:$12 sps:$4 sm:$0xff]  }
  0x4f   :  { %601 = vmatpush1.bf16.msra.mxu1 %v939_v29  ;;  %v981_v15 = vld [vmem:[#allocation5 + $0x230] ss:$12 sps:$4 sm:$0xff]   ;;  %v720_v21 = vld [vmem:[#allocation7] sm:$0xff]  ;;  %s1084_s2 = smov [#allocation8]  }
  0x50   :  { %562 = vmatpush1.bf16.msra.mxu0 %v906_v23  ;;  %602 = vmatprep.subr.bf16.mxu1 %v943_v30  ;;  %v722_v40 = vld [vmem:[#allocation7 + $0x10] sm:$0xff]  ;;  %s744_s21 = sshll.u32 %s1084_s2, 4  ;;  %s745_s21 = int_to_ptr.vmem [resolvable:$true] %s744_s21 }
  0x51   :  { %563 = vmatprep.subr.bf16.mxu0 %v910_v24  ;;  %v721_v24 = vld [vmem:[#allocation7 + $0x8] sm:$0xff]  ;;  %s1048_s22 = scalar_lea.vmem %s745_s21, 384  ;;  %p1053_p11 = scmp.lt.s32.totalorder %s745_s21, %s745_s21 }
  0x52   :  { %v730_v29 = vmul.f32 0.99999, %v721_v24  ;;  %p1049_p10 = scmp.ne.s32.totalorder %s745_s21, %s1048_s22  ;;  %p1054_p12 = scmp.lt.s32.totalorder %s1048_s22, %s1048_s22 }
  0x53   :  { %603 = vmatpush1.bf16.msra.mxu1 %v945_v33 }
  0x54   :  { %564 = vmatpush1.bf16.msra.mxu0 %v912_v27  ;;  %604 = vmatprep.subr.bf16.mxu1 %v949_v34  ;;  %p1055_p13 = por %p1054_p12, %p1053_p11 }
  0x55   :  { %565 = vmatprep.subr.bf16.mxu0 %v916_v28  ;;  %v729_v28 = vmul.f32 0.99999, %v720_v21 }
  0x56   :  { %p1056_p0 = pnand %p1055_p13, %p1049_p10 }
  0x57   :  { %605 = vmatpush1.bf16.msra.mxu1 %v951_v38 }
  0x58   :  { %566 = vmatpush1.bf16.msra.mxu0 %v918_v31  ;;  %826 = vmatprep.subr.bf16.mxu1 %v955_v41 }
  0x59   :  { %567 = vmatprep.subr.bf16.mxu0 %v922_v32 }
  0x5a   :  { %623 = vmatmul.mubr.bf16.vlgmr.msra.gmra.mrb[0].mxu1 %v1141_v44 }
  0x5b   :  { %827 = vmatpush3.bf16.msra.mxu1 %v956_v45  ;;  %663 = vmatprep.mubr.bf16.mxu1 %v67_v39  ;;  %v731_v45 = vmul.f32 0.99999, %v722_v40 }
  0x5c   :  { %568 = vmatpush1.bf16.msra.mxu0 %v924_v35  ;;  %828 = vmatprep.subr.bf16.mxu1 %v960_v46 }
  0x5d   :  { %569 = vmatprep.subr.bf16.mxu0 %v928_v37 }
  0x5f   :  { %829 = vmatpush3.bf16.msra.mxu1 %v961_v49 }
  0x60   :  { %570 = vmatpush1.bf16.msra.mxu0 %v930_v42  ;;  %830 = vmatprep.subr.bf16.mxu1 %v963_v50 }
  0x61   :  { %571 = vmatprep.subr.bf16.mxu0 %v934_v43 }
  0x63   :  { %831 = vmatpush3.bf16.msra.mxu1 %v964_v53 }
  0x64   :  { %572 = vmatpush1.bf16.msra.mxu0 %v936_v47  ;;  %832 = vmatprep.subr.bf16.mxu1 %v966_v54 }
  0x65   :  { %573 = vmatprep.subr.bf16.mxu0 %v940_v48 }
  0x67   :  { %833 = vmatpush3.bf16.msra.mxu1 %v967_v57 }
  0x68   :  { %574 = vmatpush1.bf16.msra.mxu0 %v942_v51  ;;  %834 = vmatprep.subr.bf16.mxu1 %v969_v58 }
  0x69   :  { %575 = vmatprep.subr.bf16.mxu0 %v946_v52 }
  0x6b   :  { %835 = vmatpush3.bf16.msra.mxu1 %v970_v61 }
  0x6c   :  { %576 = vmatpush1.bf16.msra.mxu0 %v948_v55  ;;  %836 = vmatprep.subr.bf16.mxu1 %v972_v62 }
  0x6d   :  { %577 = vmatprep.subr.bf16.mxu0 %v952_v56 }
  0x6f   :  { %837 = vmatpush3.bf16.msra.mxu1 %v973_v1 }
  0x70   :  { %578 = vmatpush1.bf16.msra.mxu0 %v954_v59  ;;  %838 = vmatprep.subr.bf16.mxu1 %v975_v3 }
  0x71   :  { %579 = vmatprep.subr.bf16.mxu0 %v957_v60 }
  0x73   :  { %839 = vmatpush3.bf16.msra.mxu1 %v976_v6 }
  0x74   :  { %580 = vmatpush1.bf16.msra.mxu0 %v959_v63  ;;  %840 = vmatprep.subr.bf16.mxu1 %v978_v7 }
  0x75   :  { %857 = vmatprep.subr.bf16.mxu0 %v1082_v5 }
  0x77   :  { %582 = vmatmul.mubr.bf16.vlgmr.msra.gmra.mrb[0].mxu0 %v66_v2  ;;  %841 = vmatpush3.bf16.msra.mxu1 %v979_v9 }
  0x78   :  { %858 = vmatpush3.bf16.msra.mxu0 %v962_v4  ;;  %873 = vmatprep.mubr.msk.bf16.mxu0 %vm1083_vm0, %v1082_v5 }
  0x79   :  { %859 = vmatprep.subr.bf16.mxu0 %v1082_v5 }
  0x7a   :  { %664 = vmatmul.mubr.bf16.vlgmr.msra.gmra.mrb[4].mxu1 %v66_v2 }
  0x7c   :  { %860 = vmatpush3.bf16.msra.mxu0 %v965_v8 }
  0x7d   :  { %861 = vmatprep.subr.bf16.mxu0 %v1082_v5 }
  0x80   :  { %862 = vmatpush3.bf16.msra.mxu0 %v968_v10 }
  0x81   :  { %863 = vmatprep.subr.bf16.mxu0 %v1082_v5 }
  0x84   :  { %864 = vmatpush3.bf16.msra.mxu0 %v971_v11 }
  0x85   :  { %865 = vmatprep.subr.bf16.mxu0 %v1082_v5 }
  0x88   :  { %866 = vmatpush3.bf16.msra.mxu0 %v974_v12 }
  0x89   :  { %867 = vmatprep.subr.bf16.mxu0 %v1082_v5 }
  0x8c   :  { %868 = vmatpush3.bf16.msra.mxu0 %v977_v13 }
  0x8d   :  { %869 = vmatprep.subr.bf16.mxu0 %v1082_v5 }
  0x90   :  { %870 = vmatpush3.bf16.msra.mxu0 %v980_v14 }
  0x91   :  { %871 = vmatprep.subr.bf16.mxu0 %v1082_v5 }
  0x94   :  { %872 = vmatpush3.bf16.msra.mxu0 %v981_v15 }
  0x97   :  { %874 = vmatmul.mubr.bf16.vlgmr.msra.gmra.mrb[4].mxu0 %v1141_v44 }
 0x12d   :  { %v624_v16 = vpop.f32.mrb[0].mxu1 }
 0x12e   :  { %v626_v17 = vpop.f32.mrb[1].mxu1 }
 0x12f   :  { %v628_v18 = vpop.f32.mrb[2].mxu1 }
 0x130   :  { %v629_v19 = vpop.f32.mrb[3].mxu1 }
 0x14a   :  { %v583_v20 = vpop.f32.mrb[0].mxu0 }
 0x14b   :  { %v625_v22 = vadd.f32 %v624_v16, %v583_v20  ;;  %v585_v23 = vpop.f32.mrb[1].mxu0 }
 0x14c   :  { %v627_v25 = vadd.f32 %v626_v17, %v585_v23  ;;  %v587_v26 = vpop.f32.mrb[2].mxu0 }
 0x14d   :  { %v588_v27 = vpop.f32.mrb[3].mxu0  ;;  %v726_v30 = vmul.f32 1e-05, %v625_v22  ;;  %v842_v34 = vpop.f32.mrb[4].mxu1 }
 0x14e   :  { %v727_v31 = vmul.f32 1e-05, %v627_v25  ;;  %v843_v35 = vpop.f32.mrb[5].mxu1 }
 0x14f   :  { %v732_v32 = vadd.f32 %v729_v28, %v726_v30  ;;  %v844_v36 = vadd.f32 %v843_v35, %v842_v34  ;;  %v845_v37 = vpop.f32.mrb[6].mxu1 }
 0x150   :  { %v733_v33 = vadd.f32 %v730_v29, %v727_v31  ;;  %v846_v38 = vpop.f32.mrb[7].mxu1 }
 0x151   :  { %735 = vst [vmem:[#allocation8] sm:$0xff] %v732_v32 }
 0x152   :  { %736 = vst [vmem:[#allocation8 + $0x8] sm:$0xff] %v733_v33 }
 0x16a   :  { %v705_v39 = vpop.f32.mrb[4].mxu0 }
 0x16b   :  { %v706_v41 = vadd.f32 %v844_v36, %v705_v39  ;;  %v875_v42 = vpop.f32.mrb[5].mxu0 }
 0x16c   :  { %v708_v43 = vpop.f32.mrb[6].mxu0 }
 0x16d   :  { %v876_v44 = vpop.f32.mrb[7].mxu0  ;;  %v728_v46 = vmul.f32 1e-05, %v706_v41 }
 0x16f   :  { %v734_v47 = vadd.f32 %v731_v45, %v728_v46 }
 0x171   :  { %737 = vst [vmem:[#allocation8 + $0x10] sm:$0xff] %v734_v47 }
 0x172   :  { %1059 = shalt.err (!%p1056_p0)
}
 0x173   :  { %s1060_s25 = scalar_lea.hbm %s1160_s3, 384 }
 0x174   :  { %p1061_p1 = scmp.ne.s32.totalorder %s1160_s3, %s1060_s25  ;;  %p1064_p2 = scmp.lt.u32.totalorder %s1060_s25, %s1160_s3 }
 0x176   :  { %p1066_p3 = pnand %p1064_p2, %p1061_p1 }
 0x178   :  { %1069 = shalt.err (!%p1066_p3)
}
 0x179   :  { %747 = dma.vmem_to_hbm [thread:$0]  %s745_s21, 384, %s1160_s3, [#allocation4]  }
 0x17a   :  { %1074 = dma.done.wait [#allocation4], 384  }
 0x17b   :  { %1075 = vsyncadd [#allocation4], 4294966912 }
 0x17c   :  { %751 = vsyncpa [#allocation3], 1 }
 0x17d   :  { %752 = vsyncpa [#allocation6], 1 }
 0x17e   :  { %753 = vsyncpa [#allocation4], 1 }

</bundles_post_ra>
